<compile_context>
chip_gen: v5e
topology: v5e:2x2
jax: 0.10.0
libtpu: 0.0.40
codegen_flags: <defaults>
</compile_context>

<pallas_src>
import functools

import jax
import jax.numpy as jnp
import numpy as np
from jax import lax
from jax.experimental import pallas as pl
from jax.experimental.pallas import tpu as pltpu


# ---------------------------------------------------------------------------
# Tile / VMEM planning
# ---------------------------------------------------------------------------
def _default_row_tile():
    # v6e/v7x MXU is 2x256x256 -> 256-row anchor tiles; v5e MXU is 4x128x128 -> 128.
    try:
        kind = jax.devices()[0].device_kind.lower()
    except Exception:
        kind = ""
    return 128 if "v5" in kind else 256


def _vmem_bytes_estimate(tm, b_pad, d, itemsize):
    e1_tiles = 2 * tm * d * itemsize      # double-buffered anchor tiles
    e2_resident = b_pad * d * itemsize    # normalized positives/negatives (fetched once)
    score = 2 * tm * b_pad * 4            # (TM, B) scores + exp temporaries (f32)
    out = 2 * tm * 4                      # per-row loss tiles
    return e1_tiles + e2_resident + score + out


def _choose_row_tile(b, d, itemsize, working_set_budget=20 * 1024 * 1024):
    tm = _default_row_tile()
    while tm > 128 and _vmem_bytes_estimate(tm, b + tm, d, itemsize) > working_set_budget:
        tm //= 2                           # shrink TM (never the feature dim) if over budget
    if b <= tm:
        # Tiny batches: a single tile, rounded up to the 8-row sublane granule.
        tm = max(8, -(-b // 8) * 8)
    return tm


# ---------------------------------------------------------------------------
# Stage 1: optional fc projection + L2-normalize (+ fold 1/T into the anchors)
# ---------------------------------------------------------------------------
def _prep_project_kernel(e_ref, wt_ref, b_ref, out_ref, *, inv_scale):
    # MXU matmul straight on the storage dtype (bf16 stays bf16), f32 accumulate.
    x = jnp.dot(e_ref[...], wt_ref[...], preferred_element_type=jnp.float32)
    x = x + b_ref[...].astype(jnp.float32)
    n2 = jnp.sum(x * x, axis=-1, keepdims=True)
    y = x * (lax.rsqrt(jnp.maximum(n2, 1e-24)) * inv_scale)   # rsqrt -> EUP, no divides
    out_ref[...] = y.astype(out_ref.dtype)


def _prep_norm_kernel(e_ref, out_ref, *, inv_scale):
    x = e_ref[...].astype(jnp.float32)
    n2 = jnp.sum(x * x, axis=-1, keepdims=True)
    y = x * (lax.rsqrt(jnp.maximum(n2, 1e-24)) * inv_scale)
    out_ref[...] = y.astype(out_ref.dtype)


def _prep(e, wt, bias, *, project, inv_scale, tm, out_dim, out_dtype):
    b_pad, in_dim = e.shape
    grid = (b_pad // tm,)
    if project:
        kernel = functools.partial(_prep_project_kernel, inv_scale=float(inv_scale))
        in_specs = [
            pl.BlockSpec((tm, in_dim), lambda i: (i, 0)),        # row tile (pipelined)
            pl.BlockSpec((in_dim, out_dim), lambda i: (0, 0)),   # weights resident
            pl.BlockSpec((1, out_dim), lambda i: (0, 0)),        # bias resident
        ]
        args = (e, wt, bias)
    else:
        kernel = functools.partial(_prep_norm_kernel, inv_scale=float(inv_scale))
        in_specs = [pl.BlockSpec((tm, in_dim), lambda i: (i, 0))]
        args = (e,)
    return pl.pallas_call(
        kernel,
        grid=grid,
        in_specs=in_specs,
        out_specs=pl.BlockSpec((tm, out_dim), lambda i: (i, 0)),
        out_shape=jax.ShapeDtypeStruct((b_pad, out_dim), out_dtype),
        compiler_params=pltpu.CompilerParams(dimension_semantics=("parallel",)),
    )(*args)


# ---------------------------------------------------------------------------
# Stage 2: row-tiled NT-Xent against the diagonal of cos(e1, e2)/T
# ---------------------------------------------------------------------------
def _nce_loss_kernel(e1_ref, e2_ref, loss_ref, *, tm, b_valid, b_pad):
    i = pl.program_id(0)
    e1 = e1_ref[...]          # (TM, D) normalized anchors, pre-scaled by 1/T
    e2 = e2_ref[...]          # (B_pad, D) normalized positives/negatives, VMEM-resident

    # (TM, B_pad) similarity; contract the last dim of both operands -> no XLU transpose.
    s = lax.dot_general(
        e1, e2,
        dimension_numbers=(((1,), (1,)), ((), ())),
        preferred_element_type=jnp.float32,
    )

    if b_valid < b_pad:  # static: only emitted when the batch was padded
        col = lax.broadcasted_iota(jnp.int32, s.shape, 1)
        s = jnp.where(col < b_valid, s, -1e30)

    # Positive logit: row-wise dot with the matching e2 rows (no (B,B) iota/select).
    start = pl.multiple_of(i * tm, tm)
    e2_match = e2_ref[pl.ds(start, tm), :]
    pos = jnp.sum(e1.astype(jnp.float32) * e2_match.astype(jnp.float32),
                  axis=-1, keepdims=True)                       # (TM, 1), already / T

    # Numerically stable log-sum-exp cross entropy against the diagonal.
    m = jnp.max(s, axis=-1, keepdims=True)
    denom = jnp.sum(jnp.exp(s - m), axis=-1, keepdims=True)
    loss_ref[...] = jnp.log(denom) + m - pos                    # (TM, 1)


# ---------------------------------------------------------------------------
# Wrapper
# ---------------------------------------------------------------------------
def infonce_loss(embs1, embs2, wt, bias, temperature, music_ids=None):
    """embs1: (B, dim1), embs2: (B, dim2), wt = fc.weight.T (in_dim, out_dim), bias (1, out_dim)."""
    if music_ids is not None:
        # TODO(synk): host-side np.unique gives a data-dependent B and recompiles per batch
        # composition; for production, pad to a static capacity with a validity mask instead.
        ids = np.asarray(music_ids)
        _, indices = np.unique(ids, return_index=True)
        embs1 = embs1[indices]
        embs2 = embs2[indices]

    b = embs1.shape[0]
    dim1, dim2 = embs1.shape[1], embs2.shape[1]
    out_dim = min(dim1, dim2)
    inv_t = 1.0 / float(temperature)

    emb_dtype = jnp.promote_types(embs1.dtype, embs2.dtype)
    itemsize = jnp.dtype(emb_dtype).itemsize

    tm = _choose_row_tile(b, out_dim, itemsize)
    b_pad = -(-b // tm) * tm
    if b_pad != b:
        embs1 = jnp.pad(embs1, ((0, b_pad - b), (0, 0)))
        embs2 = jnp.pad(embs2, ((0, b_pad - b), (0, 0)))

    # Stage 1: project the wider side + L2-normalize once; fold 1/T into the anchors.
    e1n = _prep(embs1, wt, bias, project=(dim1 > dim2), inv_scale=inv_t,
                tm=tm, out_dim=out_dim, out_dtype=emb_dtype)
    e2n = _prep(embs2, wt, bias, project=(dim1 < dim2), inv_scale=1.0,
                tm=tm, out_dim=out_dim, out_dtype=emb_dtype)

    # Stage 2: row-tiled NT-Xent.  Per-row losses out -> grid axis is "parallel"
    # (both v7x TensorCores split rows); the cheap mean happens in JAX below.
    # TODO(synk): if B grows so large that the resident e2n (B*out_dim) no longer fits
    # VMEM, add a second "arbitrary" grid axis tiling e2 with a flash-style running LSE.
    est = _vmem_bytes_estimate(tm, b_pad, out_dim, itemsize)
    vmem_limit = int(min(48 * 1024 * 1024, max(32 * 1024 * 1024, 2 * est)))

    kernel = functools.partial(_nce_loss_kernel, tm=tm, b_valid=b, b_pad=b_pad)
    per_row = pl.pallas_call(
        kernel,
        grid=(b_pad // tm,),
        in_specs=[
            pl.BlockSpec((tm, out_dim), lambda i: (i, 0)),       # anchor tile (pipelined)
            pl.BlockSpec((b_pad, out_dim), lambda i: (0, 0)),    # e2n resident (fetched once)
        ],
        out_specs=pl.BlockSpec((tm, 1), lambda i: (i, 0)),
        out_shape=jax.ShapeDtypeStruct((b_pad, 1), jnp.float32),
        compiler_params=pltpu.CompilerParams(
            dimension_semantics=("parallel",),
            vmem_limit_bytes=vmem_limit,
        ),
    )(e1n, e2n)

    return jnp.sum(per_row[:b, 0]) / b


# ---------------------------------------------------------------------------
# Plain-JAX reference (mirrors the PyTorch InfoNCE + NTXentLoss semantics)
# ---------------------------------------------------------------------------
def _reference_loss(embs1, embs2, wt, bias, temperature):
    dim1, dim2 = embs1.shape[1], embs2.shape[1]
    e1 = embs1.astype(jnp.float32)
    e2 = embs2.astype(jnp.float32)
    if dim1 > dim2:
        e1 = e1 @ wt + bias
    elif dim1 < dim2:
        e2 = e2 @ wt + bias
    e1 = e1 / jnp.maximum(jnp.linalg.norm(e1, axis=-1, keepdims=True), 1e-12)
    e2 = e2 / jnp.maximum(jnp.linalg.norm(e2, axis=-1, keepdims=True), 1e-12)
    s = (e1 @ e2.T) / temperature
    m = jnp.max(s, axis=-1, keepdims=True)
    exp_s = jnp.exp(s - m)
    numer = jnp.diagonal(exp_s)
    denom = jnp.sum(exp_s, axis=-1)
    tiny = jnp.finfo(jnp.float32).tiny
    return jnp.mean(-jnp.log(numer / denom + tiny))


if __name__ == "__main__":
    # Small shapes consistent with the module (dim1 < dim2, so embs2 is projected).
    B, DIM1, DIM2 = 8, 128, 256
    TEMPERATURE = 0.1

    key = jax.random.PRNGKey(0)
    k1, k2, kw, kb = jax.random.split(key, 4)

    embs1 = jax.random.normal(k1, (B, DIM1), dtype=jnp.float32)
    embs2 = jax.random.normal(k2, (B, DIM2), dtype=jnp.float32)

    # fc = nn.Linear(max(dim1,dim2), min(dim1,dim2)), PyTorch default init.
    in_dim, out_dim = max(DIM1, DIM2), min(DIM1, DIM2)
    bound = 1.0 / np.sqrt(in_dim)
    w = jax.random.uniform(kw, (out_dim, in_dim), jnp.float32, -bound, bound)
    bias = jax.random.uniform(kb, (1, out_dim), jnp.float32, -bound, bound)
    wt = w.T  # (in_dim, out_dim): projection is a plain e @ wt MXU matmul in-kernel.

    loss = infonce_loss(embs1, embs2, wt, bias, TEMPERATURE, music_ids=None)
    loss = jax.block_until_ready(loss)

    ref = jax.block_until_ready(_reference_loss(embs1, embs2, wt, bias, TEMPERATURE))
    np.testing.assert_allclose(np.asarray(loss), np.asarray(ref), rtol=1e-4, atol=1e-4)

    print("KERNEL_OK")
</pallas_src>

<mosaic_0001>
module attributes {stable_mosaic.version = 11 : i64} {
  func.func @_prep_norm_kernel(%arg0: i32, %arg1: memref<8x128xf32, #tpu.memory_space<vmem>>, %arg2: memref<8x128xf32, #tpu.memory_space<vmem>>) attributes {dimension_semantics = [#tpu.dimension_semantics<parallel>], iteration_bounds = array<i64: 1>, scalar_prefetch = 0 : i64, scratch_operands = 0 : i64, tpu.core_type = #tpu.core_type<tc>, window_params = [{transform_indices = @transform_0, window_bounds = array<i64: 8, 128>}, {transform_indices = @transform_1, window_bounds = array<i64: 8, 128>}]} {
    %c0 = arith.constant 0 : index
    %c0_0 = arith.constant 0 : index
    %0 = vector.load %arg1[%c0, %c0_0] : memref<8x128xf32, #tpu.memory_space<vmem>>, vector<8x128xf32>
    %1 = arith.mulf %0, %0 : vector<8x128xf32>
    %cst = arith.constant dense<0.000000e+00> : vector<8xf32>
    %2 = vector.multi_reduction <add>, %1, %cst [1] : vector<8x128xf32> to vector<8xf32>
    %3 = vector.shape_cast %2 : vector<8xf32> to vector<8x1xf32>
    %cst_1 = arith.constant 1.000000e-24 : f32
    %4 = vector.broadcast %cst_1 : f32 to vector<8x1xf32>
    %5 = arith.maximumf %3, %4 : vector<8x1xf32>
    %6 = math.rsqrt %5 : vector<8x1xf32>
    %cst_2 = arith.constant 1.000000e+01 : f32
    %7 = vector.broadcast %cst_2 : f32 to vector<8x1xf32>
    %8 = arith.mulf %6, %7 : vector<8x1xf32>
    %9 = vector.broadcast %8 : vector<8x1xf32> to vector<8x128xf32>
    %10 = arith.mulf %0, %9 : vector<8x128xf32>
    %c0_3 = arith.constant 0 : index
    %c0_4 = arith.constant 0 : index
    %11 = vector.load %arg2[%c0_3, %c0_4] : memref<8x128xf32, #tpu.memory_space<vmem>>, vector<8x128xf32>
    tpu.vector_store %arg2[%c0_3, %c0_4], %10 {strides = array<i32>} : memref<8x128xf32, #tpu.memory_space<vmem>>, vector<8x128xf32>,
    return
  }
  func.func @transform_0(%arg0: i32) -> (i32, i32) {
    %c0_i32 = arith.constant 0 : i32
    %c0_i32_0 = arith.constant 0 : i32
    return %arg0, %c0_i32 : i32, i32
  }
  func.func @transform_1(%arg0: i32) -> (i32, i32) {
    %c0_i32 = arith.constant 0 : i32
    %c0_i32_0 = arith.constant 0 : i32
    return %arg0, %c0_i32 : i32, i32
  }
}

</mosaic_0001>

<bundles_post_ra>
// kernel: tpu_custom_call.1
= control target key start
LH: loop header
LB: loop body
LE: loop exit
PB: predicated region body
PF: predicated region fallthrough
CT: control target
= control target key end

     0   :  { %6 = vsyncpa [#allocation3], 0  ;;  %s132_s0 = inlined_call_operand.hbm [shape: f32[8,128], index: 0, kind: input, shape index: {}]   ;;  %s133_s1 = inlined_call_operand.hbm [shape: f32[8,128], index: 1, kind: output, shape index: {}]  }
   0x1   :  { %7 = vsyncpa [#allocation4], 0  ;;  %s13_s8 = sshll.u32 %s132_s0, 4  ;;  %s114_s9 = smov [#allocation2]   ;;  %s14_s8 = int_to_ptr.hbm [resolvable:$true] %s13_s8 }
   0x2   :  { %s15_s10 = sshll.u32 %s114_s9, 4  ;;  %s16_s10 = int_to_ptr.vmem [resolvable:$true] %s15_s10 }
   0x3   :  { %18 = dma.hbm_to_vmem [thread:$0]  %s14_s8, 128, %s16_s10, [#allocation3]  }
   0x4   :  { %110 = dma.done.wait [#allocation3], 128  }
   0x5   :  { %111 = vsyncadd [#allocation3], 4294967168  ;;  %v23_v0 = vld [vmem:[#allocation2] sm:$0xff]  ;;  %s115_s0 = smov [#allocation5]   ;;  %s48_s14 = sshll.u32 %s133_s1, 4  ;;  %s49_s14 = int_to_ptr.hbm [resolvable:$true] %s48_s14 }
   0x6   :  { %v24_v1 = vmul.f32 %v23_v0, %v23_v0  ;;  %s46_s11 = sshll.u32 %s115_s0, 4  ;;  %s47_s11 = int_to_ptr.vmem [resolvable:$true] %s46_s11 }
   0x8   :  { %25 = vadd.xlane.f32.xlu0 %v24_v1 }
  0x7b   :  { %v26_v2 = vpop.xlane.xlu0 %25 }
  0x7c   :  { %v27_v3 = vmax.f32 %v26_v2, 1e-24 }
  0x7e   :  { %60 = vrsqrt.f32 %v27_v3  ;;  %vm34_vm1 = vweird.f32 %v27_v3 }
  0x84   :  { %v61_v4 = vpop.eup %60 }
  0x85   :  { %v29_v5 = vmul.f32 %v61_v4, %v27_v3  ;;  %vm35_vm0 = vweird.f32 %v61_v4 }
  0x86   :  { %vm36_vm2 = vmor %vm34_vm1, %vm35_vm0 }
  0x87   :  { %v30_v6 = vmul.f32 %v61_v4, %v29_v5 }
  0x89   :  { %v31_v7 = vmul.f32 0.5, %v30_v6 }
  0x8b   :  { %v32_v8 = vsub.f32 1.5, %v31_v7 }
  0x8d   :  { %v33_v9 = vmul.f32 %v61_v4, %v32_v8 }
  0x8f   :  { %v37_v10 = vsel %vm36_vm2, %v61_v4, %v33_v9 }
  0x90   :  { %v38_v11 = vmul.f32 10.0, %v37_v10 }
  0x92   :  { %v39_v12 = vmul.f32 %v38_v11, %v23_v0 }
  0x94   :  { %40 = vst [vmem:[#allocation5] sm:$0xff] %v39_v12 }
  0x95   :  { %51 = dma.vmem_to_hbm [thread:$0]  %s47_s11, 128, %s49_s14, [#allocation4]  }
  0x96   :  { %112 = dma.done.wait [#allocation4], 128  }
  0x97   :  { %113 = vsyncadd [#allocation4], 4294967168 }
  0x98   :  { %56 = vsyncpa [#allocation3], 1 }
  0x99   :  { %57 = vsyncpa [#allocation4], 1 }

</bundles_post_ra>
